<compile_context>
chip_gen: v7x
topology: tpu7x:2x2x1
jax: 0.10.0
libtpu: 0.0.40
codegen_flags: <defaults>
</compile_context>

<pallas_src>
import functools

import jax
import jax.numpy as jnp
from jax.experimental import pallas as pl
from jax.experimental.pallas import tpu as pltpu


_MIN_PALLAS_BYTES = 1 << 20                # below this, XLA's fused transpose wins
_SUBLANE_PACK = {4: 8, 2: 16, 1: 32}       # sublane packing per itemsize
_MAX_UNROLL_C = 64                         # cap static unroll of channel placement


def _vmem_capacity_bytes():
    """Per-TensorCore VMEM capacity; conservative default if query fails."""
    try:
        info = pltpu.get_tpu_info()
        cap = getattr(info, "vmem_capacity_bytes", None)
        if cap:
            return int(cap)
    except Exception:
        pass
    return 64 << 20  # v7x per-TC VMEM -- safe lower bound for every generation


def _channel_group(C, F):
    """Smallest divisor g of C with (g * F) % 128 == 0, or None."""
    for g in range(1, C + 1):
        if C % g == 0 and (g * F) % 128 == 0:
            return g
    return None


def _choose_gC(C, group, F, t_min, itemsize, cap):
    """Channels per block: multiple of `group`, divisor of C, fits cap/unroll."""
    cands = [g for g in range(group, C + 1, group) if C % g == 0]
    fitting = [g for g in cands
               if g * t_min * F * itemsize <= cap and g <= _MAX_UNROLL_C]
    return max(fitting) if fitting else min(cands)


def _choose_tT(T, pack, gC, F, itemsize, cap):
    """Largest sublane-aligned divisor of T (or T itself) fitting the cap."""
    cands = [T] + [t for t in range(pack, T, pack) if T % t == 0]
    row_bytes = gC * F * itemsize
    fitting = [t for t in cands if t * row_bytes <= cap]
    if fitting:
        return max(fitting)
    aligned = [t for t in cands if t != T] or [T]
    return min(aligned)


def _choose_tB(B, block_bytes_per_batch, cap):
    """Pack several batch elements per block when slabs are tiny."""
    max_tb = max(1, cap // max(block_bytes_per_batch, 1))
    tb = min(B, max_tb)
    while B % tb:
        tb -= 1
    return max(tb, 1)


def _lane_place_kernel(x_ref, o_ref, *, group):
    # x_ref: (tB, gC, tT, F)  ->  o_ref: (tB, tT, gC*F)
    # Pure lane placement: each channel group lands at a 128-aligned lane
    # offset; loads are contiguous tiles and stores are unmasked vst slabs.
    _, gC, _, F = x_ref.shape
    gw = group * F                                   # multiple of 128 by construction
    for gi in range(gC // group):                    # static unroll (gC is small)
        base = gi * group
        if group == 1:
            slab = x_ref[:, base, :, :]
        else:
            slab = jnp.concatenate(
                [x_ref[:, base + j, :, :] for j in range(group)], axis=-1)
        o_ref[:, :, gi * gw:(gi + 1) * gw] = slab


def _xla_permute(x):
    B, C, T, F = x.shape
    return jnp.transpose(x, (0, 2, 1, 3)).reshape(B * T, C, F)


def permute_0213_pallas(x):
    """(B, C, T, F) -> data of permute(0,2,1,3), returned already as (B*T, C, F)."""
    B, C, T, F = x.shape
    itemsize = jnp.dtype(x.dtype).itemsize
    total_bytes = x.size * itemsize

    # Tiny tensors: fixed pallas_call dispatch + DMA warm-up dominates.
    if total_bytes < _MIN_PALLAS_BYTES:
        return _xla_permute(x)

    group = _channel_group(C, F)
    if group is None:
        # C*F not a multiple of 128: every output row would need masked stores.
        return _xla_permute(x)

    vmem_cap = _vmem_capacity_bytes()
    tile_cap = (8 << 20) if vmem_cap >= (96 << 20) else (4 << 20)
    ceiling = min(48 << 20, (vmem_cap * 3) // 4)     # never near physical VMEM

    pack = _SUBLANE_PACK.get(itemsize, 8)
    # Cap tiles by total/4 so the grid always has >=4 steps (pipelining + megacore).
    cap = max(min(tile_cap, total_bytes // 4), pack * 128 * itemsize)

    t_min = T if T <= pack else pack
    gC = _choose_gC(C, group, F, t_min, itemsize, cap)
    tT = _choose_tT(T, pack, gC, F, itemsize, cap)
    tB = _choose_tB(B, gC * tT * F * itemsize, cap)

    tile_bytes = tB * gC * tT * F * itemsize
    steps = (B // tB) * (T // tT) * (C // gC)

    # Robustness: awkward T / huge unsplittable C*F could still blow the VMEM
    # budget, and a 1-step grid can't pipeline -- defer those to XLA.
    if steps < 2 or 4 * tile_bytes + (2 << 20) > ceiling:
        return _xla_permute(x)

    vmem_limit = int(min(ceiling, max(32 << 20, 4 * tile_bytes + (8 << 20))))

    grid = (B // tB, T // tT, C // gC)
    kernel = functools.partial(_lane_place_kernel, group=group)

    out = pl.pallas_call(
        kernel,
        out_shape=jax.ShapeDtypeStruct((B, T, C * F), x.dtype),
        grid=grid,
        in_specs=[pl.BlockSpec((tB, gC, tT, F), lambda b, t, cg: (b, cg, t, 0))],
        out_specs=pl.BlockSpec((tB, tT, gC * F), lambda b, t, cg: (b, t, cg)),
        compiler_params=pltpu.CompilerParams(
            dimension_semantics=("parallel", "parallel", "parallel"),
            vmem_limit_bytes=vmem_limit,
        ),
        cost_estimate=pl.CostEstimate(flops=0, transcendentals=0,
                                      bytes_accessed=2 * total_bytes),
    )(x)

    return out.reshape(B * T, C, F)      # free view (data already in target order)


class ReshapePallas:
    """JAX/Pallas equivalent of the PyTorch Reshape module."""

    def __init__(self, *args):
        self.shape = args

    def __call__(self, x):
        batch_size = x.shape[0]
        if self.shape[0] == -1:
            # (B, C, T, F) -> permute(0,2,1,3) -> (B*T, shape[1], F)
            assert x.ndim == 4, "Reshape(-1, k) expects a 4-D (B, C, T, F) input"
            assert self.shape[1] == x.shape[1], (
                "Reshape(-1, k): k must equal the channel dim C for the "
                "PyTorch view() to be element-count preserving")
            return permute_0213_pallas(x)
        else:
            # Pure metadata reshape (the permuted axis has size 1): free JAX views.
            h_dim = x.shape[0] // batch_size            # == 1, mirroring PyTorch code
            assert batch_size * h_dim * self.shape[0] * x.shape[2] == x.size, (
                "Reshape(k): element count mismatch for view()")
            y = x.reshape(batch_size, h_dim, self.shape[0], x.shape[2])
            return jnp.transpose(y, (0, 2, 1, 3))


def _ref_branch_a(x, shape1):
    B, C, T, F = x.shape
    return jnp.transpose(x, (0, 2, 1, 3)).reshape(B * T, shape1, F)


if __name__ == "__main__":
    key = jax.random.PRNGKey(0)

    # --- Branch A, Pallas lane-dense path (F multiple of 128) ---
    B, C, T, F = 4, 4, 256, 128              # 2 MiB f32 -> takes the Pallas path
    x = jax.random.normal(key, (B, C, T, F), dtype=jnp.float32)
    out_a = ReshapePallas(-1, C)(x)
    jax.block_until_ready(out_a)
    assert out_a.shape == (B * T, C, F), out_a.shape
    assert jnp.array_equal(out_a, _ref_branch_a(x, C)), "branch A (lane-dense) mismatch"

    # --- Branch A, Pallas path with F not a multiple of 128 (C*F is) ---
    x2 = jax.random.normal(jax.random.PRNGKey(1), (4, 4, 256, 96), dtype=jnp.float32)
    out_a2 = ReshapePallas(-1, 4)(x2)
    jax.block_until_ready(out_a2)
    assert out_a2.shape == (4 * 256, 4, 96), out_a2.shape
    assert jnp.array_equal(out_a2, _ref_branch_a(x2, 4)), "branch A (grouped) mismatch"

    # --- Branch A, tiny input -> small-input XLA escape path ---
    x3 = jax.random.normal(jax.random.PRNGKey(2), (2, 4, 16, 16), dtype=jnp.float32)
    out_a3 = ReshapePallas(-1, 4)(x3)
    jax.block_until_ready(out_a3)
    assert out_a3.shape == (2 * 16, 4, 16), out_a3.shape
    assert jnp.array_equal(out_a3, _ref_branch_a(x3, 4)), "branch A (small escape) mismatch"

    # --- Branch B: pure metadata reshape applied to a 3-D tensor ---
    out_b = ReshapePallas(4)(out_a3)
    jax.block_until_ready(out_b)
    ref_b = jnp.transpose(out_a3.reshape(out_a3.shape[0], 1, 4, out_a3.shape[2]),
                          (0, 2, 1, 3))
    assert out_b.shape == ref_b.shape, out_b.shape
    assert jnp.array_equal(out_b, ref_b), "branch B mismatch"

    print("KERNEL_OK")
</pallas_src>

<mosaic_0001>
module attributes {stable_mosaic.version = 11 : i64} {
  func.func @_lane_place_kernel(%arg0: i32, %arg1: i32, %arg2: i32, %arg3: memref<1x4x256x128xf32, #tpu.memory_space<vmem>>, %arg4: memref<1x256x512xf32, #tpu.memory_space<vmem>>) attributes {dimension_semantics = [#tpu.dimension_semantics<parallel>, #tpu.dimension_semantics<parallel>, #tpu.dimension_semantics<parallel>], iteration_bounds = array<i64: 4, 1, 1>, scalar_prefetch = 0 : i64, scratch_operands = 0 : i64, tpu.core_type = #tpu.core_type<tc>, window_params = [{transform_indices = @transform_0, window_bounds = array<i64: 1, 4, 256, 128>}, {transform_indices = @transform_1, window_bounds = array<i64: 1, 256, 512>}]} {
    %c0 = arith.constant 0 : index
    %c0_0 = arith.constant 0 : index
    %c0_1 = arith.constant 0 : index
    %c0_2 = arith.constant 0 : index
    %0 = vector.load %arg3[%c0, %c0_0, %c0_1, %c0_2] : memref<1x4x256x128xf32, #tpu.memory_space<vmem>>, vector<1x1x256x128xf32>
    %1 = vector.shape_cast %0 : vector<1x1x256x128xf32> to vector<1x256x128xf32>
    %c0_3 = arith.constant 0 : index
    %c0_4 = arith.constant 0 : index
    %c0_5 = arith.constant 0 : index
    %2 = vector.load %arg4[%c0_3, %c0_4, %c0_5] : memref<1x256x512xf32, #tpu.memory_space<vmem>>, vector<1x256x128xf32>
    tpu.vector_store %arg4[%c0_3, %c0_4, %c0_5], %1 {strides = array<i32>} : memref<1x256x512xf32, #tpu.memory_space<vmem>>, vector<1x256x128xf32>,
    %c0_6 = arith.constant 0 : index
    %c1 = arith.constant 1 : index
    %c0_7 = arith.constant 0 : index
    %c0_8 = arith.constant 0 : index
    %3 = vector.load %arg3[%c0_6, %c1, %c0_7, %c0_8] : memref<1x4x256x128xf32, #tpu.memory_space<vmem>>, vector<1x1x256x128xf32>
    %4 = vector.shape_cast %3 : vector<1x1x256x128xf32> to vector<1x256x128xf32>
    %c0_9 = arith.constant 0 : index
    %c0_10 = arith.constant 0 : index
    %c128 = arith.constant 128 : index
    %5 = vector.load %arg4[%c0_9, %c0_10, %c128] : memref<1x256x512xf32, #tpu.memory_space<vmem>>, vector<1x256x128xf32>
    tpu.vector_store %arg4[%c0_9, %c0_10, %c128], %4 {strides = array<i32>} : memref<1x256x512xf32, #tpu.memory_space<vmem>>, vector<1x256x128xf32>,
    %c0_11 = arith.constant 0 : index
    %c2 = arith.constant 2 : index
    %c0_12 = arith.constant 0 : index
    %c0_13 = arith.constant 0 : index
    %6 = vector.load %arg3[%c0_11, %c2, %c0_12, %c0_13] : memref<1x4x256x128xf32, #tpu.memory_space<vmem>>, vector<1x1x256x128xf32>
    %7 = vector.shape_cast %6 : vector<1x1x256x128xf32> to vector<1x256x128xf32>
    %c0_14 = arith.constant 0 : index
    %c0_15 = arith.constant 0 : index
    %c256 = arith.constant 256 : index
    %8 = vector.load %arg4[%c0_14, %c0_15, %c256] : memref<1x256x512xf32, #tpu.memory_space<vmem>>, vector<1x256x128xf32>
    tpu.vector_store %arg4[%c0_14, %c0_15, %c256], %7 {strides = array<i32>} : memref<1x256x512xf32, #tpu.memory_space<vmem>>, vector<1x256x128xf32>,
    %c0_16 = arith.constant 0 : index
    %c3 = arith.constant 3 : index
    %c0_17 = arith.constant 0 : index
    %c0_18 = arith.constant 0 : index
    %9 = vector.load %arg3[%c0_16, %c3, %c0_17, %c0_18] : memref<1x4x256x128xf32, #tpu.memory_space<vmem>>, vector<1x1x256x128xf32>
    %10 = vector.shape_cast %9 : vector<1x1x256x128xf32> to vector<1x256x128xf32>
    %c0_19 = arith.constant 0 : index
    %c0_20 = arith.constant 0 : index
    %c384 = arith.constant 384 : index
    %11 = vector.load %arg4[%c0_19, %c0_20, %c384] : memref<1x256x512xf32, #tpu.memory_space<vmem>>, vector<1x256x128xf32>
    tpu.vector_store %arg4[%c0_19, %c0_20, %c384], %10 {strides = array<i32>} : memref<1x256x512xf32, #tpu.memory_space<vmem>>, vector<1x256x128xf32>,
    return
  }
  func.func @transform_0(%arg0: i32, %arg1: i32, %arg2: i32) -> (i32, i32, i32, i32) {
    %c0_i32 = arith.constant 0 : i32
    %c0_i32_0 = arith.constant 0 : i32
    return %arg0, %arg2, %arg1, %c0_i32 : i32, i32, i32, i32
  }
  func.func @transform_1(%arg0: i32, %arg1: i32, %arg2: i32) -> (i32, i32, i32) {
    %c0_i32 = arith.constant 0 : i32
    return %arg0, %arg1, %arg2 : i32, i32, i32
  }
}

</mosaic_0001>

<bundles_post_ra>
// kernel: tpu_custom_call.1
= control target key start
LH: loop header
LB: loop body
LE: loop exit
PB: predicated region body
PF: predicated region fallthrough
CT: control target
= control target key end

     0   :  { %6 = vsyncpa [#allocation3], 0  ;;  %s1286_s0 = inlined_call_operand.hbm [shape: f32[4,4,256,128], index: 0, kind: input, shape index: {}]   ;;  %s1287_s1 = inlined_call_operand.hbm [shape: f32[4,256,512], index: 1, kind: output, shape index: {}]  }
   0x1   :  { %8 = vsyncpa [#allocation3 + $0x1], 0 }
   0x2   :  { %9 = vsyncpa [#allocation4], 0 }
   0x3   :  { %11 = vsyncpa [#allocation4 + $0x1], 0  ;;  %s852_s6 = smov 0   ;;  %s854_s7 = smov 0  }
   0x4   :  { %s856_s8 = smov 0   ;;  %s858_s9 = smov 0  }
   0x5   :  { %s860_s10 = smov 0   ;;  %s862_s11 = smov 0  }
   0x6 LB: > { %s543_s12 = sadd.s32 4294967295, %s834_s11   ;;  %s544_s13 = sadd.s32 4294967294, %s834_s11   ;;  %s834_s11 = sphi %s862_s11, %s17_s11   ;;  %s830_s10 = sphi %s860_s10, %s1301_s10   ;;  %s826_s9 = sphi %s858_s9, %s1300_s9   ;;  %s822_s8 = sphi %s856_s8, %s1299_s8   ;;  %s818_s7 = sphi %s854_s7, %s1298_s7   ;;  %s814_s6 = sphi %s852_s6, %s1297_s6  }
   0x7   : > { %s36_s14 = sadd.s32 1, %s830_s10  ;;  %s47_s15 = sadd.s32 1, %s822_s8 }
   0x8   : > { %p38_p0 = scmp.ge.s32.totalorder %s36_s14, 4  ;;  %p54_p1 = scmp.ne.s32.totalorder %s822_s8, %s818_s7 }
   0x9   : > { %p55_p2 = scmp.eq.s32.totalorder %s834_s11, 0  ;;  %p60_p3 = scmp.ne.s32.totalorder %s818_s7, %s814_s6 }
   0xa   : > { %s1303_s14 = smov (%p38_p0, %s36_s14), 0  ;;  %p61_p5 = scmp.eq.s32.totalorder %s543_s12, 0 }
   0xb   : > { %p893_p4 = por %p55_p2, %p54_p1  ;;  %s40_s17 = ssub.s32 %s830_s10, %s1303_s14 }
   0xc   : > { %p88_p6 = scmp.eq.s32.totalorder %s543_s12, 3  ;;  %p45_p7 = scmp.eq.s32.totalorder %s40_s17, 0 }
   0xd   : > { %p899_p8 = por %p61_p5, %p60_p3  ;;  %p94_p10 = scmp.eq.s32.totalorder %s544_s13, 3 }
   0xe   : > { %p903_p9 = por %p88_p6, %p54_p1  ;;  %p668_p12 = scmp.lt.s32.totalorder %s834_s11, 4 }
   0xf   : > { %s908_s20 = scalar_select %p45_p7, %s822_s8, %s47_s15  }
  0x10   : > { %s1291_s19 = scalar_select %p903_p9, 1, 0 }
  0x11   : > { %p910_p11 = por %p94_p10, %p60_p3  ;;  %s114_s22 = sand.u32 1, %s822_s8  }
  0x12   : > { %s547_s23 = sshll.u32 %s114_s22, 10  ;;  %s654_s24 = sshll.u32 %s830_s10, 14 }
  0x13   : > { %s1292_s21 = scalar_select %p910_p11, 1, 0 }
  0x14   : > { %s920_s27 = scalar_lea.hbm %s1286_s0, %s654_s24  ;;  %s118_s28 = scalar_lea.vmem [#allocation2], %s547_s23 }
  0x15   : > { %s130_s29 = sshll.u32 %s118_s28, 4  ;;  %p926_p13 = pnand %p668_p12, %p893_p4  ;;  %s922_s29 = int_to_ptr.vmem [resolvable:$true] %s130_s29 }
  0x16   : > { %s931_s2 = scalar_lea.sflag [#allocation3], %s114_s22  ;;  %s722_s3 = scalar_lea.hbm %s920_s27, 16384 }
  0x17   : > { %p723_p1 = scmp.ne.s32.totalorder %s920_s27, %s722_s3  ;;  %p724_p2 = pneg %p926_p13 }
  0x18   : > { %s727_s12 = scalar_lea.hbm %s1286_s0, 65536  ;;  %p728_p4 = scmp.lt.u32.totalorder %s920_s27, %s1286_s0 }
  0x19   : > { %p725_p3 = pnand %p724_p2, %p723_p1  ;;  %p729_p6 = scmp.lt.u32.totalorder %s727_s12, %s722_s3 }
  0x1a   : > { %p731_p10 = scmp.lt.u32.totalorder %s722_s3, %s920_s27 }
  0x1b   : > { %p726_p5 = pneg %p725_p3  ;;  %p730_p7 = por %p729_p6, %p728_p4 }
  0x1d   : > { %p732_p12 = por %p731_p10, %p730_p7 }
  0x1f   : > { %p733_p0 = pnand %p732_p12, %p726_p5 }
  0x21   : > { %736 = shalt.err (!%p733_p0)
}
  0x22   : > { %s737_s16 = scalar_lea.vmem %s922_s29, 16384  ;;  %s836_s17 = smov [#allocation2]  }
  0x23   : > { %p738_p1 = scmp.ne.s32.totalorder %s922_s29, %s737_s16  ;;  %s742_s22 = sshll.u32 %s836_s17, 4  ;;  %s743_s22 = int_to_ptr.vmem [resolvable:$false] %s742_s22 }
  0x24   : > { %s744_s23 = scalar_lea.vmem %s743_s22, 32768  ;;  %p745_p9 = scmp.lt.s32.totalorder %s922_s29, %s743_s22 }
  0x25   : > { %p740_p3 = pnand %p738_p1, %p724_p2  ;;  %p746_p4 = scmp.lt.s32.totalorder %s744_s23, %s737_s16 }
  0x27   : > { %p741_p11 = pneg %p740_p3  ;;  %p747_p6 = por %p746_p4, %p745_p9 }
  0x29   : > { %p748_p7 = pnand %p747_p6, %p741_p11 }
  0x2b   : > { %751 = shalt.err (!%p748_p7)
}
  0x2c   : > { %s837_s24 = smov 128   ;;  %s838_s25 = smov 8  }
  0x2d   : > { %663 = dma.hbm_to_vmem [thread:$0]  (!%p926_p13), %s920_s27, 16384, %s922_s29, %s931_s2, %s837_s24, %s837_s24, %s838_s25  }
  0x2e   : > { %p138_p0 = scmp.lt.s32.totalorder %s834_s11, 5  ;;  %p1294_p2 = scmp.ge.s32.totalorder %s834_s11, 1 }
  0x30   : > { %p139_p5 = pnand %p1294_p2, %p138_p0 }
  0x31   : > { %s963_s26 = sand.u32 (!%p139_p5), 1, %s818_s7  }
  0x32   : > { %142 = sbr.rel (%p139_p5) target bundleno = 137 (0x89), region = 24  ;;  %s551_s28 = sshll.u32 (!%p139_p5), %s963_s26, 10 }
  0x33   : > { %s145_s3 = scalar_lea.sflag (!%p139_p5), [#allocation3], %s963_s26  ;;  %s967_s4 = scalar_lea.vmem (!%p139_p5), [#allocation2], %s551_s28 }
  0x39   : > { %805 = dma.done.wait (%p899_p8), %s145_s3, 16384  }
  0x3a   : > { %807 = vsyncadd (%p899_p8), %s145_s3, 4294950912  ;;  %v171_v0 = vld [vmem:[%s967_s4] sm:$0xff]  ;;  %v172_v1 = vld [vmem:[%s967_s4 + $0x8] sm:$0xff]  ;;  %s976_s27 = scalar_lea.vmem [#allocation5], %s551_s28  ;;  %s655_s18 = sshll.u32 %s826_s9, 14 }
  0x3b   : > { %v173_v2 = vld [vmem:[%s967_s4 + $0x10] sm:$0xff]  ;;  %203 = vst [vmem:[%s976_s27] sm:$0xff] %v171_v0  ;;  %204 = vst [vmem:[%s976_s27 + $0x20] sm:$0xff] %v172_v1  ;;  %v174_v3 = vld [vmem:[%s967_s4 + $0x18] sm:$0xff]  ;;  %s449_s29 = sshll.u32 %s976_s27, 4  ;;  %s1223_s2 = scalar_lea.hbm %s1287_s1, %s655_s18  ;;  %s1225_s29 = int_to_ptr.vmem [resolvable:$true] %s449_s29 }
  0x3c   : > { %205 = vst [vmem:[%s976_s27 + $0x40] sm:$0xff] %v173_v2  ;;  %v175_v4 = vld [vmem:[%s967_s4 + $0x20] sm:$0xff]  ;;  %v176_v5 = vld [vmem:[%s967_s4 + $0x28] sm:$0xff]  ;;  %206 = vst [vmem:[%s976_s27 + $0x60] sm:$0xff] %v174_v3  ;;  %s431_s5 = scalar_lea.sflag [#allocation4], %s963_s26  ;;  %s752_s12 = scalar_lea.vmem %s1225_s29, 16384 }
  0x3d   : > { %207 = vst [vmem:[%s976_s27 + $0x80] sm:$0xff] %v175_v4  ;;  %208 = vst [vmem:[%s976_s27 + $0xa0] sm:$0xff] %v176_v5  ;;  %v177_v6 = vld [vmem:[%s967_s4 + $0x30] sm:$0xff]  ;;  %v178_v7 = vld [vmem:[%s967_s4 + $0x38] sm:$0xff]  ;;  %p753_p8 = scmp.ne.s32.totalorder %s1225_s29, %s752_s12  ;;  %p1295_p9 = scmp.ne.s32.totalorder %s1291_s19, 0 }
  0x3e   : > { %v179_v8 = vld [vmem:[%s967_s4 + $0x40] sm:$0xff]  ;;  %209 = vst [vmem:[%s976_s27 + $0xc0] sm:$0xff] %v177_v6  ;;  %210 = vst [vmem:[%s976_s27 + $0xe0] sm:$0xff] %v178_v7  ;;  %v180_v9 = vld [vmem:[%s967_s4 + $0x48] sm:$0xff]  ;;  %s839_s13 = smov [#allocation5]  }
  0x3f   : > { %211 = vst [vmem:[%s976_s27 + $0x100] sm:$0xff] %v179_v8  ;;  %v181_v10 = vld [vmem:[%s967_s4 + $0x50] sm:$0xff]  ;;  %v182_v11 = vld [vmem:[%s967_s4 + $0x58] sm:$0xff]  ;;  %212 = vst [vmem:[%s976_s27 + $0x120] sm:$0xff] %v180_v9  ;;  %p754_p11 = pnand %p753_p8, %p1295_p9  ;;  %s756_s15 = sshll.u32 %s839_s13, 4  ;;  %s757_s15 = int_to_ptr.vmem [resolvable:$false] %s756_s15 }
  0x40   : > { %213 = vst [vmem:[%s976_s27 + $0x140] sm:$0xff] %v181_v10  ;;  %214 = vst [vmem:[%s976_s27 + $0x160] sm:$0xff] %v182_v11  ;;  %v183_v12 = vld [vmem:[%s967_s4 + $0x60] sm:$0xff]  ;;  %v184_v13 = vld [vmem:[%s967_s4 + $0x68] sm:$0xff]  ;;  %s758_s16 = scalar_lea.vmem %s757_s15, 32768  ;;  %p759_p10 = scmp.lt.s32.totalorder %s1225_s29, %s757_s15 }
  0x41   : > { %v185_v14 = vld [vmem:[%s967_s4 + $0x70] sm:$0xff]  ;;  %215 = vst [vmem:[%s976_s27 + $0x180] sm:$0xff] %v183_v12  ;;  %216 = vst [vmem:[%s976_s27 + $0x1a0] sm:$0xff] %v184_v13  ;;  %v186_v15 = vld [vmem:[%s967_s4 + $0x78] sm:$0xff]  ;;  %p755_p13 = pneg %p754_p11  ;;  %p760_p12 = scmp.lt.s32.totalorder %s758_s16, %s752_s12 }
  0x42   : > { %217 = vst [vmem:[%s976_s27 + $0x1c0] sm:$0xff] %v185_v14  ;;  %v187_v16 = vld [vmem:[%s967_s4 + $0x80] sm:$0xff]  ;;  %v188_v17 = vld [vmem:[%s967_s4 + $0x88] sm:$0xff]  ;;  %218 = vst [vmem:[%s976_s27 + $0x1e0] sm:$0xff] %v186_v15 }
  0x43   : > { %219 = vst [vmem:[%s976_s27 + $0x200] sm:$0xff] %v187_v16  ;;  %220 = vst [vmem:[%s976_s27 + $0x220] sm:$0xff] %v188_v17  ;;  %v189_v18 = vld [vmem:[%s967_s4 + $0x90] sm:$0xff]  ;;  %v190_v19 = vld [vmem:[%s967_s4 + $0x98] sm:$0xff]  ;;  %p761_p1 = por %p760_p12, %p759_p10 }
  0x44   : > { %v191_v20 = vld [vmem:[%s967_s4 + $0xa0] sm:$0xff]  ;;  %221 = vst [vmem:[%s976_s27 + $0x240] sm:$0xff] %v189_v18  ;;  %222 = vst [vmem:[%s976_s27 + $0x260] sm:$0xff] %v190_v19  ;;  %v192_v21 = vld [vmem:[%s967_s4 + $0xa8] sm:$0xff] }
  0x45   : > { %223 = vst [vmem:[%s976_s27 + $0x280] sm:$0xff] %v191_v20  ;;  %v193_v22 = vld [vmem:[%s967_s4 + $0xb0] sm:$0xff]  ;;  %v194_v23 = vld [vmem:[%s967_s4 + $0xb8] sm:$0xff]  ;;  %224 = vst [vmem:[%s976_s27 + $0x2a0] sm:$0xff] %v192_v21  ;;  %p762_p3 = pnand %p761_p1, %p755_p13 }
  0x46   : > { %225 = vst [vmem:[%s976_s27 + $0x2c0] sm:$0xff] %v193_v22  ;;  %226 = vst [vmem:[%s976_s27 + $0x2e0] sm:$0xff] %v194_v23  ;;  %v195_v24 = vld [vmem:[%s967_s4 + $0xc0] sm:$0xff]  ;;  %v196_v25 = vld [vmem:[%s967_s4 + $0xc8] sm:$0xff] }
  0x47   : > { %v197_v26 = vld [vmem:[%s967_s4 + $0xd0] sm:$0xff]  ;;  %227 = vst [vmem:[%s976_s27 + $0x300] sm:$0xff] %v195_v24  ;;  %228 = vst [vmem:[%s976_s27 + $0x320] sm:$0xff] %v196_v25  ;;  %v198_v27 = vld [vmem:[%s967_s4 + $0xd8] sm:$0xff] }
  0x48   : > { %229 = vst [vmem:[%s976_s27 + $0x340] sm:$0xff] %v197_v26  ;;  %v199_v28 = vld [vmem:[%s967_s4 + $0xe0] sm:$0xff]  ;;  %v200_v29 = vld [vmem:[%s967_s4 + $0xe8] sm:$0xff]  ;;  %230 = vst [vmem:[%s976_s27 + $0x360] sm:$0xff] %v198_v27 }
  0x49   : > { %231 = vst [vmem:[%s976_s27 + $0x380] sm:$0xff] %v199_v28  ;;  %232 = vst [vmem:[%s976_s27 + $0x3a0] sm:$0xff] %v200_v29  ;;  %v201_v30 = vld [vmem:[%s967_s4 + $0xf0] sm:$0xff]  ;;  %v202_v31 = vld [vmem:[%s967_s4 + $0xf8] sm:$0xff] }
  0x4a   : > { %v553_v32 = vld [vmem:[%s967_s4 + $0x100] sm:$0xff]  ;;  %233 = vst [vmem:[%s976_s27 + $0x3c0] sm:$0xff] %v201_v30  ;;  %234 = vst [vmem:[%s976_s27 + $0x3e0] sm:$0xff] %v202_v31  ;;  %v554_v33 = vld [vmem:[%s967_s4 + $0x108] sm:$0xff] }
  0x4b   : > { %268 = vst [vmem:[%s976_s27 + $0x8] sm:$0xff] %v553_v32  ;;  %v555_v34 = vld [vmem:[%s967_s4 + $0x110] sm:$0xff]  ;;  %v556_v35 = vld [vmem:[%s967_s4 + $0x118] sm:$0xff]  ;;  %269 = vst [vmem:[%s976_s27 + $0x28] sm:$0xff] %v554_v33 }
  0x4c   : > { %270 = vst [vmem:[%s976_s27 + $0x48] sm:$0xff] %v555_v34  ;;  %271 = vst [vmem:[%s976_s27 + $0x68] sm:$0xff] %v556_v35  ;;  %v557_v36 = vld [vmem:[%s967_s4 + $0x120] sm:$0xff]  ;;  %v558_v37 = vld [vmem:[%s967_s4 + $0x128] sm:$0xff] }
  0x4d   : > { %v559_v38 = vld [vmem:[%s967_s4 + $0x130] sm:$0xff]  ;;  %272 = vst [vmem:[%s976_s27 + $0x88] sm:$0xff] %v557_v36  ;;  %273 = vst [vmem:[%s976_s27 + $0xa8] sm:$0xff] %v558_v37  ;;  %v560_v39 = vld [vmem:[%s967_s4 + $0x138] sm:$0xff] }
  0x4e   : > { %274 = vst [vmem:[%s976_s27 + $0xc8] sm:$0xff] %v559_v38  ;;  %v561_v40 = vld [vmem:[%s967_s4 + $0x140] sm:$0xff]  ;;  %v562_v41 = vld [vmem:[%s967_s4 + $0x148] sm:$0xff]  ;;  %275 = vst [vmem:[%s976_s27 + $0xe8] sm:$0xff] %v560_v39 }
  0x4f   : > { %276 = vst [vmem:[%s976_s27 + $0x108] sm:$0xff] %v561_v40  ;;  %277 = vst [vmem:[%s976_s27 + $0x128] sm:$0xff] %v562_v41  ;;  %v563_v42 = vld [vmem:[%s967_s4 + $0x150] sm:$0xff]  ;;  %v564_v43 = vld [vmem:[%s967_s4 + $0x158] sm:$0xff] }
  0x50   : > { %v565_v44 = vld [vmem:[%s967_s4 + $0x160] sm:$0xff]  ;;  %278 = vst [vmem:[%s976_s27 + $0x148] sm:$0xff] %v563_v42  ;;  %279 = vst [vmem:[%s976_s27 + $0x168] sm:$0xff] %v564_v43  ;;  %v566_v45 = vld [vmem:[%s967_s4 + $0x168] sm:$0xff] }
  0x51   : > { %280 = vst [vmem:[%s976_s27 + $0x188] sm:$0xff] %v565_v44  ;;  %v567_v46 = vld [vmem:[%s967_s4 + $0x170] sm:$0xff]  ;;  %v568_v47 = vld [vmem:[%s967_s4 + $0x178] sm:$0xff]  ;;  %281 = vst [vmem:[%s976_s27 + $0x1a8] sm:$0xff] %v566_v45 }
  0x52   : > { %282 = vst [vmem:[%s976_s27 + $0x1c8] sm:$0xff] %v567_v46  ;;  %283 = vst [vmem:[%s976_s27 + $0x1e8] sm:$0xff] %v568_v47  ;;  %v569_v48 = vld [vmem:[%s967_s4 + $0x180] sm:$0xff]  ;;  %v570_v49 = vld [vmem:[%s967_s4 + $0x188] sm:$0xff] }
  0x53   : > { %v571_v50 = vld [vmem:[%s967_s4 + $0x190] sm:$0xff]  ;;  %284 = vst [vmem:[%s976_s27 + $0x208] sm:$0xff] %v569_v48  ;;  %285 = vst [vmem:[%s976_s27 + $0x228] sm:$0xff] %v570_v49  ;;  %v572_v51 = vld [vmem:[%s967_s4 + $0x198] sm:$0xff] }
  0x54   : > { %286 = vst [vmem:[%s976_s27 + $0x248] sm:$0xff] %v571_v50  ;;  %v573_v52 = vld [vmem:[%s967_s4 + $0x1a0] sm:$0xff]  ;;  %v574_v53 = vld [vmem:[%s967_s4 + $0x1a8] sm:$0xff]  ;;  %287 = vst [vmem:[%s976_s27 + $0x268] sm:$0xff] %v572_v51 }
  0x55   : > { %288 = vst [vmem:[%s976_s27 + $0x288] sm:$0xff] %v573_v52  ;;  %289 = vst [vmem:[%s976_s27 + $0x2a8] sm:$0xff] %v574_v53  ;;  %v575_v54 = vld [vmem:[%s967_s4 + $0x1b0] sm:$0xff]  ;;  %v576_v55 = vld [vmem:[%s967_s4 + $0x1b8] sm:$0xff] }
  0x56   : > { %v577_v56 = vld [vmem:[%s967_s4 + $0x1c0] sm:$0xff]  ;;  %290 = vst [vmem:[%s976_s27 + $0x2c8] sm:$0xff] %v575_v54  ;;  %291 = vst [vmem:[%s976_s27 + $0x2e8] sm:$0xff] %v576_v55  ;;  %v578_v57 = vld [vmem:[%s967_s4 + $0x1c8] sm:$0xff] }
  0x57   : > { %292 = vst [vmem:[%s976_s27 + $0x308] sm:$0xff] %v577_v56  ;;  %v579_v58 = vld [vmem:[%s967_s4 + $0x1d0] sm:$0xff]  ;;  %v580_v59 = vld [vmem:[%s967_s4 + $0x1d8] sm:$0xff]  ;;  %293 = vst [vmem:[%s976_s27 + $0x328] sm:$0xff] %v578_v57 }
  0x58   : > { %294 = vst [vmem:[%s976_s27 + $0x348] sm:$0xff] %v579_v58  ;;  %295 = vst [vmem:[%s976_s27 + $0x368] sm:$0xff] %v580_v59  ;;  %v581_v60 = vld [vmem:[%s967_s4 + $0x1e0] sm:$0xff]  ;;  %v582_v61 = vld [vmem:[%s967_s4 + $0x1e8] sm:$0xff] }
  0x59   : > { %v583_v62 = vld [vmem:[%s967_s4 + $0x1f0] sm:$0xff]  ;;  %296 = vst [vmem:[%s976_s27 + $0x388] sm:$0xff] %v581_v60  ;;  %297 = vst [vmem:[%s976_s27 + $0x3a8] sm:$0xff] %v582_v61  ;;  %v584_v63 = vld [vmem:[%s967_s4 + $0x1f8] sm:$0xff] }
  0x5a   : > { %298 = vst [vmem:[%s976_s27 + $0x3c8] sm:$0xff] %v583_v62  ;;  %v585_v0 = vld [vmem:[%s967_s4 + $0x200] sm:$0xff]  ;;  %v586_v1 = vld [vmem:[%s967_s4 + $0x208] sm:$0xff]  ;;  %299 = vst [vmem:[%s976_s27 + $0x3e8] sm:$0xff] %v584_v63 }
  0x5b   : > { %333 = vst [vmem:[%s976_s27 + $0x10] sm:$0xff] %v585_v0  ;;  %334 = vst [vmem:[%s976_s27 + $0x30] sm:$0xff] %v586_v1  ;;  %v587_v2 = vld [vmem:[%s967_s4 + $0x210] sm:$0xff]  ;;  %v588_v3 = vld [vmem:[%s967_s4 + $0x218] sm:$0xff] }
  0x5c   : > { %v589_v4 = vld [vmem:[%s967_s4 + $0x220] sm:$0xff]  ;;  %335 = vst [vmem:[%s976_s27 + $0x50] sm:$0xff] %v587_v2  ;;  %336 = vst [vmem:[%s976_s27 + $0x70] sm:$0xff] %v588_v3  ;;  %v590_v5 = vld [vmem:[%s967_s4 + $0x228] sm:$0xff] }
  0x5d   : > { %337 = vst [vmem:[%s976_s27 + $0x90] sm:$0xff] %v589_v4  ;;  %v591_v6 = vld [vmem:[%s967_s4 + $0x230] sm:$0xff]  ;;  %v592_v7 = vld [vmem:[%s967_s4 + $0x238] sm:$0xff]  ;;  %338 = vst [vmem:[%s976_s27 + $0xb0] sm:$0xff] %v590_v5 }
  0x5e   : > { %339 = vst [vmem:[%s976_s27 + $0xd0] sm:$0xff] %v591_v6  ;;  %340 = vst [vmem:[%s976_s27 + $0xf0] sm:$0xff] %v592_v7  ;;  %v593_v8 = vld [vmem:[%s967_s4 + $0x240] sm:$0xff]  ;;  %v594_v9 = vld [vmem:[%s967_s4 + $0x248] sm:$0xff] }
  0x5f   : > { %v595_v10 = vld [vmem:[%s967_s4 + $0x250] sm:$0xff]  ;;  %341 = vst [vmem:[%s976_s27 + $0x110] sm:$0xff] %v593_v8  ;;  %342 = vst [vmem:[%s976_s27 + $0x130] sm:$0xff] %v594_v9  ;;  %v596_v11 = vld [vmem:[%s967_s4 + $0x258] sm:$0xff] }
  0x60   : > { %343 = vst [vmem:[%s976_s27 + $0x150] sm:$0xff] %v595_v10  ;;  %v597_v12 = vld [vmem:[%s967_s4 + $0x260] sm:$0xff]  ;;  %v598_v13 = vld [vmem:[%s967_s4 + $0x268] sm:$0xff]  ;;  %344 = vst [vmem:[%s976_s27 + $0x170] sm:$0xff] %v596_v11 }
  0x61   : > { %345 = vst [vmem:[%s976_s27 + $0x190] sm:$0xff] %v597_v12  ;;  %346 = vst [vmem:[%s976_s27 + $0x1b0] sm:$0xff] %v598_v13  ;;  %v599_v14 = vld [vmem:[%s967_s4 + $0x270] sm:$0xff]  ;;  %v600_v15 = vld [vmem:[%s967_s4 + $0x278] sm:$0xff] }
  0x62   : > { %v601_v16 = vld [vmem:[%s967_s4 + $0x280] sm:$0xff]  ;;  %347 = vst [vmem:[%s976_s27 + $0x1d0] sm:$0xff] %v599_v14  ;;  %348 = vst [vmem:[%s976_s27 + $0x1f0] sm:$0xff] %v600_v15  ;;  %v602_v17 = vld [vmem:[%s967_s4 + $0x288] sm:$0xff] }
  0x63   : > { %349 = vst [vmem:[%s976_s27 + $0x210] sm:$0xff] %v601_v16  ;;  %v603_v18 = vld [vmem:[%s967_s4 + $0x290] sm:$0xff]  ;;  %v604_v19 = vld [vmem:[%s967_s4 + $0x298] sm:$0xff]  ;;  %350 = vst [vmem:[%s976_s27 + $0x230] sm:$0xff] %v602_v17 }
  0x64   : > { %351 = vst [vmem:[%s976_s27 + $0x250] sm:$0xff] %v603_v18  ;;  %352 = vst [vmem:[%s976_s27 + $0x270] sm:$0xff] %v604_v19  ;;  %v605_v20 = vld [vmem:[%s967_s4 + $0x2a0] sm:$0xff]  ;;  %v606_v21 = vld [vmem:[%s967_s4 + $0x2a8] sm:$0xff] }
  0x65   : > { %v607_v22 = vld [vmem:[%s967_s4 + $0x2b0] sm:$0xff]  ;;  %353 = vst [vmem:[%s976_s27 + $0x290] sm:$0xff] %v605_v20  ;;  %354 = vst [vmem:[%s976_s27 + $0x2b0] sm:$0xff] %v606_v21  ;;  %v608_v23 = vld [vmem:[%s967_s4 + $0x2b8] sm:$0xff] }
  0x66   : > { %355 = vst [vmem:[%s976_s27 + $0x2d0] sm:$0xff] %v607_v22  ;;  %v609_v24 = vld [vmem:[%s967_s4 + $0x2c0] sm:$0xff]  ;;  %v610_v25 = vld [vmem:[%s967_s4 + $0x2c8] sm:$0xff]  ;;  %356 = vst [vmem:[%s976_s27 + $0x2f0] sm:$0xff] %v608_v23 }
  0x67   : > { %357 = vst [vmem:[%s976_s27 + $0x310] sm:$0xff] %v609_v24  ;;  %358 = vst [vmem:[%s976_s27 + $0x330] sm:$0xff] %v610_v25  ;;  %v611_v26 = vld [vmem:[%s967_s4 + $0x2d0] sm:$0xff]  ;;  %v612_v27 = vld [vmem:[%s967_s4 + $0x2d8] sm:$0xff] }
  0x68   : > { %v613_v28 = vld [vmem:[%s967_s4 + $0x2e0] sm:$0xff]  ;;  %359 = vst [vmem:[%s976_s27 + $0x350] sm:$0xff] %v611_v26  ;;  %360 = vst [vmem:[%s976_s27 + $0x370] sm:$0xff] %v612_v27  ;;  %v614_v29 = vld [vmem:[%s967_s4 + $0x2e8] sm:$0xff] }
  0x69   : > { %361 = vst [vmem:[%s976_s27 + $0x390] sm:$0xff] %v613_v28  ;;  %v615_v30 = vld [vmem:[%s967_s4 + $0x2f0] sm:$0xff]  ;;  %v616_v31 = vld [vmem:[%s967_s4 + $0x2f8] sm:$0xff]  ;;  %362 = vst [vmem:[%s976_s27 + $0x3b0] sm:$0xff] %v614_v29 }
  0x6a   : > { %363 = vst [vmem:[%s976_s27 + $0x3d0] sm:$0xff] %v615_v30  ;;  %364 = vst [vmem:[%s976_s27 + $0x3f0] sm:$0xff] %v616_v31  ;;  %v617_v32 = vld [vmem:[%s967_s4 + $0x300] sm:$0xff]  ;;  %v618_v33 = vld [vmem:[%s967_s4 + $0x308] sm:$0xff] }
  0x6b   : > { %v619_v34 = vld [vmem:[%s967_s4 + $0x310] sm:$0xff]  ;;  %398 = vst [vmem:[%s976_s27 + $0x18] sm:$0xff] %v617_v32  ;;  %399 = vst [vmem:[%s976_s27 + $0x38] sm:$0xff] %v618_v33  ;;  %v620_v35 = vld [vmem:[%s967_s4 + $0x318] sm:$0xff] }
  0x6c   : > { %400 = vst [vmem:[%s976_s27 + $0x58] sm:$0xff] %v619_v34  ;;  %v621_v36 = vld [vmem:[%s967_s4 + $0x320] sm:$0xff]  ;;  %v622_v37 = vld [vmem:[%s967_s4 + $0x328] sm:$0xff]  ;;  %401 = vst [vmem:[%s976_s27 + $0x78] sm:$0xff] %v620_v35 }
  0x6d   : > { %402 = vst [vmem:[%s976_s27 + $0x98] sm:$0xff] %v621_v36  ;;  %403 = vst [vmem:[%s976_s27 + $0xb8] sm:$0xff] %v622_v37  ;;  %v623_v38 = vld [vmem:[%s967_s4 + $0x330] sm:$0xff]  ;;  %v624_v39 = vld [vmem:[%s967_s4 + $0x338] sm:$0xff] }
  0x6e   : > { %v625_v40 = vld [vmem:[%s967_s4 + $0x340] sm:$0xff]  ;;  %404 = vst [vmem:[%s976_s27 + $0xd8] sm:$0xff] %v623_v38  ;;  %405 = vst [vmem:[%s976_s27 + $0xf8] sm:$0xff] %v624_v39  ;;  %v626_v41 = vld [vmem:[%s967_s4 + $0x348] sm:$0xff] }
  0x6f   : > { %406 = vst [vmem:[%s976_s27 + $0x118] sm:$0xff] %v625_v40  ;;  %v627_v42 = vld [vmem:[%s967_s4 + $0x350] sm:$0xff]  ;;  %v628_v43 = vld [vmem:[%s967_s4 + $0x358] sm:$0xff]  ;;  %407 = vst [vmem:[%s976_s27 + $0x138] sm:$0xff] %v626_v41 }
  0x70   : > { %408 = vst [vmem:[%s976_s27 + $0x158] sm:$0xff] %v627_v42  ;;  %409 = vst [vmem:[%s976_s27 + $0x178] sm:$0xff] %v628_v43  ;;  %v629_v44 = vld [vmem:[%s967_s4 + $0x360] sm:$0xff]  ;;  %v630_v45 = vld [vmem:[%s967_s4 + $0x368] sm:$0xff] }
  0x71   : > { %v631_v46 = vld [vmem:[%s967_s4 + $0x370] sm:$0xff]  ;;  %410 = vst [vmem:[%s976_s27 + $0x198] sm:$0xff] %v629_v44  ;;  %411 = vst [vmem:[%s976_s27 + $0x1b8] sm:$0xff] %v630_v45  ;;  %v632_v47 = vld [vmem:[%s967_s4 + $0x378] sm:$0xff] }
  0x72   : > { %412 = vst [vmem:[%s976_s27 + $0x1d8] sm:$0xff] %v631_v46  ;;  %v633_v48 = vld [vmem:[%s967_s4 + $0x380] sm:$0xff]  ;;  %v634_v49 = vld [vmem:[%s967_s4 + $0x388] sm:$0xff]  ;;  %413 = vst [vmem:[%s976_s27 + $0x1f8] sm:$0xff] %v632_v47 }
  0x73   : > { %414 = vst [vmem:[%s976_s27 + $0x218] sm:$0xff] %v633_v48  ;;  %415 = vst [vmem:[%s976_s27 + $0x238] sm:$0xff] %v634_v49  ;;  %v635_v50 = vld [vmem:[%s967_s4 + $0x390] sm:$0xff]  ;;  %v636_v51 = vld [vmem:[%s967_s4 + $0x398] sm:$0xff] }
  0x74   : > { %v637_v52 = vld [vmem:[%s967_s4 + $0x3a0] sm:$0xff]  ;;  %416 = vst [vmem:[%s976_s27 + $0x258] sm:$0xff] %v635_v50  ;;  %417 = vst [vmem:[%s976_s27 + $0x278] sm:$0xff] %v636_v51  ;;  %v638_v53 = vld [vmem:[%s967_s4 + $0x3a8] sm:$0xff] }
  0x75   : > { %418 = vst [vmem:[%s976_s27 + $0x298] sm:$0xff] %v637_v52  ;;  %v639_v54 = vld [vmem:[%s967_s4 + $0x3b0] sm:$0xff]  ;;  %v640_v55 = vld [vmem:[%s967_s4 + $0x3b8] sm:$0xff]  ;;  %419 = vst [vmem:[%s976_s27 + $0x2b8] sm:$0xff] %v638_v53 }
  0x76   : > { %420 = vst [vmem:[%s976_s27 + $0x2d8] sm:$0xff] %v639_v54  ;;  %421 = vst [vmem:[%s976_s27 + $0x2f8] sm:$0xff] %v640_v55  ;;  %v641_v56 = vld [vmem:[%s967_s4 + $0x3c0] sm:$0xff]  ;;  %v642_v57 = vld [vmem:[%s967_s4 + $0x3c8] sm:$0xff] }
  0x77   : > { %v643_v58 = vld [vmem:[%s967_s4 + $0x3d0] sm:$0xff]  ;;  %422 = vst [vmem:[%s976_s27 + $0x318] sm:$0xff] %v641_v56  ;;  %423 = vst [vmem:[%s976_s27 + $0x338] sm:$0xff] %v642_v57  ;;  %v644_v59 = vld [vmem:[%s967_s4 + $0x3d8] sm:$0xff] }
  0x78   : > { %424 = vst [vmem:[%s976_s27 + $0x358] sm:$0xff] %v643_v58  ;;  %v645_v60 = vld [vmem:[%s967_s4 + $0x3e0] sm:$0xff]  ;;  %v646_v61 = vld [vmem:[%s967_s4 + $0x3e8] sm:$0xff]  ;;  %425 = vst [vmem:[%s976_s27 + $0x378] sm:$0xff] %v644_v59 }
  0x79   : > { %426 = vst [vmem:[%s976_s27 + $0x398] sm:$0xff] %v645_v60  ;;  %427 = vst [vmem:[%s976_s27 + $0x3b8] sm:$0xff] %v646_v61  ;;  %v647_v62 = vld [vmem:[%s967_s4 + $0x3f0] sm:$0xff]  ;;  %v648_v63 = vld [vmem:[%s967_s4 + $0x3f8] sm:$0xff] }
  0x7a   : > { %428 = vst [vmem:[%s976_s27 + $0x3d8] sm:$0xff] %v647_v62  ;;  %429 = vst [vmem:[%s976_s27 + $0x3f8] sm:$0xff] %v648_v63 }
  0x7b   : > { %765 = shalt.err (!%p762_p3)
}
  0x7c   : > { %s766_s17 = scalar_lea.hbm %s1223_s2, 16384  ;;  %s770_s24 = scalar_lea.hbm %s1287_s1, 65536 }
  0x7d   : > { %p767_p4 = scmp.ne.s32.totalorder %s1223_s2, %s766_s17  ;;  %p771_p0 = scmp.lt.u32.totalorder %s1223_s2, %s1287_s1 }
  0x7e   : > { %p772_p2 = scmp.lt.u32.totalorder %s770_s24, %s766_s17  ;;  %p774_p8 = scmp.lt.u32.totalorder %s766_s17, %s1223_s2 }
  0x7f   : > { %p768_p6 = pnand %p767_p4, %p1295_p9 }
  0x80   : > { %p773_p5 = por %p772_p2, %p771_p0 }
  0x81   : > { %p769_p7 = pneg %p768_p6 }
  0x82   : > { %p775_p11 = por %p774_p8, %p773_p5 }
  0x84   : > { %p776_p13 = pnand %p775_p11, %p769_p7 }
  0x86   : > { %779 = shalt.err (!%p776_p13)
}
  0x87   : > { %s840_s3 = smov 512   ;;  %s841_s4 = smov 32  }
  0x88   : > { %658 = dma.vmem_to_hbm [thread:$0]  (%p1295_p9), %s1225_s29, 16384, %s1223_s2, %s431_s5, %s840_s3, %s840_s3, %s841_s4  }
  0x89 PF: > { %p669_p10 = scmp.ge.s32.totalorder %s834_s11, 2  ;;  %s464_s27 = sand.u32 1, %s814_s6  }
  0x8a   : > { %p1296_p12 = scmp.ne.s32.totalorder %s1292_s21, 0  ;;  %s465_s18 = scalar_lea.sflag [#allocation4], %s464_s27 }
  0x8c   : > { %p665_p1 = pnand %p669_p10, %p1296_p12 }
  0x8e   : > { %809 = dma.done.wait (!%p665_p1), %s465_s18, 16384  }
  0x8f   : > { %811 = vsyncadd (!%p665_p1), %s465_s18, 4294950912  ;;  %s17_s11 = sadd.s32 1, %s834_s11   ;;  %s1297_s6 = smov %s818_s7 }
  0x90   : > { %p14_p3 = scmp.ge.s32.totalorder %s17_s11, 6   ;;  %s1298_s7 = smov %s822_s8 }
  0x91   : > { %s1299_s8 = smov %s908_s20  ;;  %s1300_s9 = smov %s830_s10 }
  0x92   : > { %s1301_s10 = smov %s1303_s14  ;;  %16 = sbr.rel (!%p14_p3) target bundleno = 6 (0x6), region = 72 }
  0x99   :  { %470 = vsyncpa [#allocation3], 1 }
  0x9a   :  { %472 = vsyncpa [#allocation3 + $0x1], 1 }
  0x9b   :  { %473 = vsyncpa [#allocation4], 1 }
  0x9c   :  { %475 = vsyncpa [#allocation4 + $0x1], 1 }

</bundles_post_ra>
